<compile_context>
chip_gen: v6e
topology: v6e:2x2x1
jax: 0.10.0
libtpu: 0.0.40
codegen_flags: <defaults>
</compile_context>

<pallas_src>
import functools

import jax
import jax.numpy as jnp
from jax.experimental import pallas as pl
from jax.experimental.pallas import tpu as pltpu

_EPS = 1e-8  # torch.nn.CosineSimilarity default eps


def _infonce_kernel(*refs, inv_temp, tile_rows, batch, has_neg):
    if has_neg:
        q_f_ref, p_f_ref, q_sq_ref, p_sq_ref, n_ref, loss_ref = refs
    else:
        q_f_ref, p_f_ref, q_sq_ref, p_sq_ref, loss_ref = refs
        n_ref = None

    row0 = pl.program_id(0) * tile_rows
    if tile_rows % 8 == 0:
        row0 = pl.multiple_of(row0, 8)

    # Row tiles are sliced out of the resident full blocks (no extra HBM pass).
    q_t = q_f_ref[pl.ds(row0, tile_rows), :]     # (TB, D), native dtype
    p_t = p_f_ref[pl.ds(row0, tile_rows), :]     # (TB, D), native dtype
    q_f = q_f_ref[...]                           # (B, D) resident
    p_f = p_f_ref[...]                           # (B, D) resident

    eps_sq = jnp.float32(_EPS * _EPS)
    neg_inf = jnp.float32(-jnp.inf)

    # Per-row squared norms of the tiles (small: TB x D, O(B*D) total work).
    q_t32 = q_t.astype(jnp.float32)
    p_t32 = p_t.astype(jnp.float32)
    qt_sq = jnp.sum(q_t32 * q_t32, axis=-1, keepdims=True)   # (TB, 1)
    pt_sq = jnp.sum(p_t32 * p_t32, axis=-1, keepdims=True)   # (TB, 1)

    # Full-batch squared norms precomputed in the wrapper (lane-major rows).
    qf_sq_row = q_sq_ref[...]                                 # (1, B)
    pf_sq_row = p_sq_ref[...]                                 # (1, B)

    # Pairwise dot products on the MXU, native dtype in / f32 accumulate.
    dn = (((1,), (1,)), ((), ()))   # A @ B^T (contract last dims)
    qp = jax.lax.dot_general(q_t, p_f, dn, preferred_element_type=jnp.float32)  # (TB, B)
    qq = jax.lax.dot_general(q_t, q_f, dn, preferred_element_type=jnp.float32)  # (TB, B)
    pp = jax.lax.dot_general(p_t, p_f, dn, preferred_element_type=jnp.float32)  # (TB, B)

    # Fused rsqrt on squared-norm products: max(|a||b|, eps) == sqrt(max(|a|^2|b|^2, eps^2))
    sim_qp = qp * jax.lax.rsqrt(jnp.maximum(qt_sq * pf_sq_row, eps_sq))
    sim_qq = qq * jax.lax.rsqrt(jnp.maximum(qt_sq * qf_sq_row, eps_sq))
    sim_pp = pp * jax.lax.rsqrt(jnp.maximum(pt_sq * pf_sq_row, eps_sq))

    # Diagonal mask (global row index = row0 + local row).
    rows = jax.lax.broadcasted_iota(jnp.int32, (tile_rows, batch), 0) + row0
    cols = jax.lax.broadcasted_iota(jnp.int32, (tile_rows, batch), 1)
    diag = rows == cols

    a_qp = sim_qp * inv_temp
    a_qq = jnp.where(diag, neg_inf, sim_qq * inv_temp)
    a_pp = jnp.where(diag, neg_inf, sim_pp * inv_temp)

    m = jnp.max(a_qp, axis=-1, keepdims=True)
    m = jnp.maximum(m, jnp.max(a_qq, axis=-1, keepdims=True))
    m = jnp.maximum(m, jnp.max(a_pp, axis=-1, keepdims=True))

    if has_neg:
        n_t = n_ref[...]                                       # (TB, K, D), native dtype
        # Batched matvec on the MXU: no (TB, K, D) f32 broadcast temporary.
        pn = jnp.einsum('bqd,bkd->bqk', p_t[:, None, :], n_t,
                        preferred_element_type=jnp.float32)[:, 0, :]   # (TB, K)
        n_t32 = n_t.astype(jnp.float32)
        n_sq = jnp.sum(n_t32 * n_t32, axis=-1)                 # (TB, K)
        a_qn = (pn * jax.lax.rsqrt(jnp.maximum(pt_sq * n_sq, eps_sq))) * inv_temp
        m = jnp.maximum(m, jnp.max(a_qn, axis=-1, keepdims=True))

    # Per-row cross entropy: logsumexp(row) - scores[i, i].
    s = jnp.sum(jnp.exp(a_qp - m), axis=-1, keepdims=True)
    s = s + jnp.sum(jnp.exp(a_qq - m), axis=-1, keepdims=True)
    s = s + jnp.sum(jnp.exp(a_pp - m), axis=-1, keepdims=True)
    if has_neg:
        s = s + jnp.sum(jnp.exp(a_qn - m), axis=-1, keepdims=True)

    lse = m + jnp.log(s)                                        # (TB, 1)
    target = jnp.sum(jnp.where(diag, a_qp, 0.0), axis=-1, keepdims=True)
    loss_ref[...] = lse - target


def improved_infonce_loss(q_emb, p_emb, n_emb=None, temperature=1.0,
                          row_tile=None):
    B, D = q_emb.shape
    has_neg = n_emb is not None
    K = 0
    if has_neg:
        assert n_emb.shape[0] == B and n_emb.shape[-1] == D
        K = n_emb.shape[1]

    # Row-tile heuristic: cap at 256 (fills the v6e/v7x MXU, fits v7x VMEM)
    # and prefer >= 2 grid steps so v7x's second TensorCore has work.
    if row_tile is not None:
        tb = row_tile
    else:
        tb = B
        if B > 128:
            for cand in (256, 128):
                if B % cand == 0 and B // cand >= 2:
                    tb = cand
                    break
    assert B % tb == 0, (B, tb)
    assert tb == B or tb % 8 == 0, (B, tb)

    # Hoisted full-batch squared norms, lane-major (1, B), computed once.
    q_sq_row = jnp.sum(q_emb.astype(jnp.float32) ** 2, axis=-1)[None, :]
    p_sq_row = jnp.sum(p_emb.astype(jnp.float32) ** 2, axis=-1)[None, :]

    in_specs = [
        pl.BlockSpec((B, D), lambda i: (0, 0)),     # q full, stays resident
        pl.BlockSpec((B, D), lambda i: (0, 0)),     # p full, stays resident
        pl.BlockSpec((1, B), lambda i: (0, 0)),     # q squared norms (lane-major)
        pl.BlockSpec((1, B), lambda i: (0, 0)),     # p squared norms (lane-major)
    ]
    args = [q_emb, p_emb, q_sq_row, p_sq_row]
    if has_neg:
        in_specs.append(pl.BlockSpec((tb, K, D), lambda i: (i, 0, 0)))
        args.append(n_emb)

    # Explicit VMEM budget sized to the working set (v5e default scope = 16 MiB).
    itemsize = q_emb.dtype.itemsize
    est = (2 * 2 * B * D * itemsize                      # resident q/p blocks
           + (2 * tb * K * D * n_emb.dtype.itemsize if has_neg else 0)
           + 8 * tb * B * 4                              # (TB, B) logits/exp temporaries
           + (2 << 20))
    vmem_limit = int(min(max(est, 32 << 20), 64 << 20))

    kernel = functools.partial(
        _infonce_kernel,
        inv_temp=float(1.0 / temperature),   # static scalar
        tile_rows=tb, batch=B, has_neg=has_neg)

    per_row = pl.pallas_call(
        kernel,
        out_shape=jax.ShapeDtypeStruct((B, 1), jnp.float32),
        grid=(B // tb,),
        in_specs=in_specs,
        out_specs=pl.BlockSpec((tb, 1), lambda i: (i, 0)),
        compiler_params=pltpu.CompilerParams(
            dimension_semantics=("parallel",),
            vmem_limit_bytes=vmem_limit),
    )(*args)

    # Tiny epilogue: mean of B per-row losses, kept outside the kernel so the
    # grid axis stays "parallel".
    return jnp.mean(per_row)


def _reference(q_emb, p_emb, n_emb=None, temperature=1.0):
    """Pure-JAX mirror of the PyTorch forward, for correctness checking."""

    def cos(a, b):
        num = jnp.sum(a * b, axis=-1)
        den = jnp.linalg.norm(a, axis=-1) * jnp.linalg.norm(b, axis=-1)
        return num / jnp.maximum(den, _EPS)

    B = q_emb.shape[0]
    sim_qp = cos(q_emb[:, None, :], p_emb[None, :, :])
    sim_qq = cos(q_emb[:, None, :], q_emb[None, :, :])
    sim_pp = cos(p_emb[:, None, :], p_emb[None, :, :])
    eye = jnp.eye(B, dtype=bool)
    sim_qq = jnp.where(eye, -jnp.inf, sim_qq)
    sim_pp = jnp.where(eye, -jnp.inf, sim_pp)
    blocks = [sim_qp, sim_qq, sim_pp]
    if n_emb is not None:
        blocks.append(cos(p_emb[:, None, :], n_emb))
    scores = jnp.concatenate(blocks, axis=1) / temperature
    lse = jax.nn.logsumexp(scores, axis=1)
    labels = jnp.arange(B)
    return jnp.mean(lse - scores[labels, labels])


if __name__ == "__main__":
    key = jax.random.PRNGKey(0)
    kq, kp, kn = jax.random.split(key, 3)

    # Case 1: with explicit negatives, single row tile.
    B, K, D = 8, 4, 32
    q = jax.random.normal(kq, (B, D), dtype=jnp.float32)
    p = jax.random.normal(kp, (B, D), dtype=jnp.float32)
    n = jax.random.normal(kn, (B, K, D), dtype=jnp.float32)
    out1 = improved_infonce_loss(q, p, n, temperature=0.05)
    jax.block_until_ready(out1)
    ref1 = _reference(q, p, n, temperature=0.05)
    assert jnp.allclose(out1, ref1, rtol=1e-4, atol=1e-4), (out1, ref1)

    # Case 2: larger batch with forced row tiling (grid of 2) + negatives.
    B2 = 16
    kq2, kp2, kn2 = jax.random.split(jax.random.PRNGKey(1), 3)
    q2 = jax.random.normal(kq2, (B2, D), dtype=jnp.float32)
    p2 = jax.random.normal(kp2, (B2, D), dtype=jnp.float32)
    n2 = jax.random.normal(kn2, (B2, K, D), dtype=jnp.float32)
    out2 = improved_infonce_loss(q2, p2, n2, temperature=1.0, row_tile=8)
    jax.block_until_ready(out2)
    ref2 = _reference(q2, p2, n2, temperature=1.0)
    assert jnp.allclose(out2, ref2, rtol=1e-4, atol=1e-4), (out2, ref2)

    # Case 3: n_emb=None branch of the module.
    out3 = improved_infonce_loss(q, p, None, temperature=0.5)
    jax.block_until_ready(out3)
    ref3 = _reference(q, p, None, temperature=0.5)
    assert jnp.allclose(out3, ref3, rtol=1e-4, atol=1e-4), (out3, ref3)

    print("KERNEL_OK")
</pallas_src>

<mosaic_0001>
module attributes {stable_mosaic.version = 11 : i64} {
  func.func @_infonce_kernel(%arg0: i32, %arg1: memref<8x32xf32, #tpu.memory_space<vmem>>, %arg2: memref<8x32xf32, #tpu.memory_space<vmem>>, %arg3: memref<1x8xf32, #tpu.memory_space<vmem>>, %arg4: memref<1x8xf32, #tpu.memory_space<vmem>>, %arg5: memref<8x4x32xf32, #tpu.memory_space<vmem>>, %arg6: memref<8x1xf32, #tpu.memory_space<vmem>>) attributes {dimension_semantics = [#tpu.dimension_semantics<parallel>], iteration_bounds = array<i64: 1>, scalar_prefetch = 0 : i64, scratch_operands = 0 : i64, tpu.core_type = #tpu.core_type<tc>, window_params = [{pipeline_mode = #tpu.pipeline_mode<synchronous>, transform_indices = @transform_0, window_bounds = array<i64: 8, 32>}, {pipeline_mode = #tpu.pipeline_mode<synchronous>, transform_indices = @transform_1, window_bounds = array<i64: 8, 32>}, {pipeline_mode = #tpu.pipeline_mode<synchronous>, transform_indices = @transform_2, window_bounds = array<i64: 1, 8>}, {pipeline_mode = #tpu.pipeline_mode<synchronous>, transform_indices = @transform_3, window_bounds = array<i64: 1, 8>}, {transform_indices = @transform_4, window_bounds = array<i64: 8, 4, 32>}, {transform_indices = @transform_5, window_bounds = array<i64: 8, 1>}]} {
    %c8_i32 = arith.constant 8 : i32
    %0 = arith.muli %arg0, %c8_i32 : i32
    %1 = tpu.assume_multiple %0, 8 : i32
    %2 = arith.index_cast %1 : i32 to index
    %c0 = arith.constant 0 : index
    %3 = vector.load %arg1[%2, %c0] : memref<8x32xf32, #tpu.memory_space<vmem>>, vector<8x32xf32>
    %4 = arith.index_cast %1 : i32 to index
    %c0_0 = arith.constant 0 : index
    %5 = vector.load %arg2[%4, %c0_0] : memref<8x32xf32, #tpu.memory_space<vmem>>, vector<8x32xf32>
    %c0_1 = arith.constant 0 : index
    %c0_2 = arith.constant 0 : index
    %6 = vector.load %arg1[%c0_1, %c0_2] : memref<8x32xf32, #tpu.memory_space<vmem>>, vector<8x32xf32>
    %c0_3 = arith.constant 0 : index
    %c0_4 = arith.constant 0 : index
    %7 = vector.load %arg2[%c0_3, %c0_4] : memref<8x32xf32, #tpu.memory_space<vmem>>, vector<8x32xf32>
    %8 = arith.mulf %3, %3 : vector<8x32xf32>
    %cst = arith.constant dense<0.000000e+00> : vector<8xf32>
    %9 = vector.multi_reduction <add>, %8, %cst [1] : vector<8x32xf32> to vector<8xf32>
    %10 = vector.shape_cast %9 : vector<8xf32> to vector<8x1xf32>
    %11 = arith.mulf %5, %5 : vector<8x32xf32>
    %cst_5 = arith.constant dense<0.000000e+00> : vector<8xf32>
    %12 = vector.multi_reduction <add>, %11, %cst_5 [1] : vector<8x32xf32> to vector<8xf32>
    %13 = vector.shape_cast %12 : vector<8xf32> to vector<8x1xf32>
    %c0_6 = arith.constant 0 : index
    %c0_7 = arith.constant 0 : index
    %14 = vector.load %arg3[%c0_6, %c0_7] : memref<1x8xf32, #tpu.memory_space<vmem>>, vector<1x8xf32>
    %c0_8 = arith.constant 0 : index
    %c0_9 = arith.constant 0 : index
    %15 = vector.load %arg4[%c0_8, %c0_9] : memref<1x8xf32, #tpu.memory_space<vmem>>, vector<1x8xf32>
    %cst_10 = arith.constant dense<0.000000e+00> : vector<8x8xf32>
    %16 = tpu.matmul %3, %7, %cst_10 {dimension_numbers = #tpu.dot_dimension_numbers<[1], [1], [0], [0], [0, 0, 1, 0], [], []>} : vector<8x32xf32>, vector<8x32xf32>, vector<8x8xf32> -> vector<8x8xf32>
    %cst_11 = arith.constant dense<0.000000e+00> : vector<8x8xf32>
    %17 = tpu.matmul %3, %6, %cst_11 {dimension_numbers = #tpu.dot_dimension_numbers<[1], [1], [0], [0], [0, 0, 1, 0], [], []>} : vector<8x32xf32>, vector<8x32xf32>, vector<8x8xf32> -> vector<8x8xf32>
    %cst_12 = arith.constant dense<0.000000e+00> : vector<8x8xf32>
    %18 = tpu.matmul %5, %7, %cst_12 {dimension_numbers = #tpu.dot_dimension_numbers<[1], [1], [0], [0], [0, 0, 1, 0], [], []>} : vector<8x32xf32>, vector<8x32xf32>, vector<8x8xf32> -> vector<8x8xf32>
    %19 = vector.broadcast %10 : vector<8x1xf32> to vector<8x8xf32>
    %20 = vector.broadcast %15 : vector<1x8xf32> to vector<8x8xf32>
    %21 = arith.mulf %19, %20 : vector<8x8xf32>
    %cst_13 = arith.constant 1.000000e-16 : f32
    %22 = vector.broadcast %cst_13 : f32 to vector<8x8xf32>
    %23 = arith.maximumf %21, %22 : vector<8x8xf32>
    %24 = math.rsqrt %23 : vector<8x8xf32>
    %25 = arith.mulf %16, %24 : vector<8x8xf32>
    %26 = vector.broadcast %10 : vector<8x1xf32> to vector<8x8xf32>
    %27 = vector.broadcast %14 : vector<1x8xf32> to vector<8x8xf32>
    %28 = arith.mulf %26, %27 : vector<8x8xf32>
    %cst_14 = arith.constant 1.000000e-16 : f32
    %29 = vector.broadcast %cst_14 : f32 to vector<8x8xf32>
    %30 = arith.maximumf %28, %29 : vector<8x8xf32>
    %31 = math.rsqrt %30 : vector<8x8xf32>
    %32 = arith.mulf %17, %31 : vector<8x8xf32>
    %33 = vector.broadcast %13 : vector<8x1xf32> to vector<8x8xf32>
    %34 = vector.broadcast %15 : vector<1x8xf32> to vector<8x8xf32>
    %35 = arith.mulf %33, %34 : vector<8x8xf32>
    %cst_15 = arith.constant 1.000000e-16 : f32
    %36 = vector.broadcast %cst_15 : f32 to vector<8x8xf32>
    %37 = arith.maximumf %35, %36 : vector<8x8xf32>
    %38 = math.rsqrt %37 : vector<8x8xf32>
    %39 = arith.mulf %18, %38 : vector<8x8xf32>
    %40 = tpu.iota {dimensions = array<i32: 0>} : vector<8x8xi32>
    %41 = vector.broadcast %1 : i32 to vector<8x8xi32>
    %42 = arith.addi %40, %41 : vector<8x8xi32>
    %43 = tpu.iota {dimensions = array<i32: 1>} : vector<8x8xi32>
    %44 = arith.cmpi eq, %42, %43 : vector<8x8xi32>
    %cst_16 = arith.constant 2.000000e+01 : f32
    %45 = vector.broadcast %cst_16 : f32 to vector<8x8xf32>
    %46 = arith.mulf %25, %45 : vector<8x8xf32>
    %cst_17 = arith.constant 2.000000e+01 : f32
    %47 = vector.broadcast %cst_17 : f32 to vector<8x8xf32>
    %48 = arith.mulf %32, %47 : vector<8x8xf32>
    %cst_18 = arith.constant 0xFF800000 : f32
    %49 = vector.broadcast %cst_18 : f32 to vector<8x8xf32>
    %50 = arith.select %44, %49, %48 : vector<8x8xi1>, vector<8x8xf32>
    %cst_19 = arith.constant 2.000000e+01 : f32
    %51 = vector.broadcast %cst_19 : f32 to vector<8x8xf32>
    %52 = arith.mulf %39, %51 : vector<8x8xf32>
    %cst_20 = arith.constant 0xFF800000 : f32
    %53 = vector.broadcast %cst_20 : f32 to vector<8x8xf32>
    %54 = arith.select %44, %53, %52 : vector<8x8xi1>, vector<8x8xf32>
    %cst_21 = arith.constant dense<0xFF800000> : vector<8xf32>
    %55 = vector.multi_reduction <maximumf>, %46, %cst_21 [1] : vector<8x8xf32> to vector<8xf32>
    %56 = vector.shape_cast %55 : vector<8xf32> to vector<8x1xf32>
    %cst_22 = arith.constant dense<0xFF800000> : vector<8xf32>
    %57 = vector.multi_reduction <maximumf>, %50, %cst_22 [1] : vector<8x8xf32> to vector<8xf32>
    %58 = vector.shape_cast %57 : vector<8xf32> to vector<8x1xf32>
    %59 = arith.maximumf %56, %58 : vector<8x1xf32>
    %cst_23 = arith.constant dense<0xFF800000> : vector<8xf32>
    %60 = vector.multi_reduction <maximumf>, %54, %cst_23 [1] : vector<8x8xf32> to vector<8xf32>
    %61 = vector.shape_cast %60 : vector<8xf32> to vector<8x1xf32>
    %62 = arith.maximumf %59, %61 : vector<8x1xf32>
    %c0_24 = arith.constant 0 : index
    %c0_25 = arith.constant 0 : index
    %c0_26 = arith.constant 0 : index
    %63 = vector.load %arg5[%c0_24, %c0_25, %c0_26] : memref<8x4x32xf32, #tpu.memory_space<vmem>>, vector<8x4x32xf32>
    %64 = vector.shape_cast %5 : vector<8x32xf32> to vector<8x1x32xf32>
    "tpu.trace_start"() <{level = 10 : i32, message = "bqd,bkd->bqk"}> : () -> ()
    %cst_27 = arith.constant dense<0.000000e+00> : vector<8x1x4xf32>
    %65 = tpu.matmul %64, %63, %cst_27 {dimension_numbers = #tpu.dot_dimension_numbers<[2], [2], [1], [1], [0, 0, 0, 1, 1, 1], [0], [0]>} : vector<8x1x32xf32>, vector<8x4x32xf32>, vector<8x1x4xf32> -> vector<8x1x4xf32>
    "tpu.trace_stop"() : () -> ()
    %66 = vector.shape_cast %65 : vector<8x1x4xf32> to vector<8x4xf32>
    %67 = arith.mulf %63, %63 : vector<8x4x32xf32>
    %cst_28 = arith.constant dense<0.000000e+00> : vector<8x4xf32>
    %68 = vector.multi_reduction <add>, %67, %cst_28 [2] : vector<8x4x32xf32> to vector<8x4xf32>
    %69 = vector.broadcast %13 : vector<8x1xf32> to vector<8x4xf32>
    %70 = arith.mulf %69, %68 : vector<8x4xf32>
    %cst_29 = arith.constant 1.000000e-16 : f32
    %71 = vector.broadcast %cst_29 : f32 to vector<8x4xf32>
    %72 = arith.maximumf %70, %71 : vector<8x4xf32>
    %73 = math.rsqrt %72 : vector<8x4xf32>
    %74 = arith.mulf %66, %73 : vector<8x4xf32>
    %cst_30 = arith.constant 2.000000e+01 : f32
    %75 = vector.broadcast %cst_30 : f32 to vector<8x4xf32>
    %76 = arith.mulf %74, %75 : vector<8x4xf32>
    %cst_31 = arith.constant dense<0xFF800000> : vector<8xf32>
    %77 = vector.multi_reduction <maximumf>, %76, %cst_31 [1] : vector<8x4xf32> to vector<8xf32>
    %78 = vector.shape_cast %77 : vector<8xf32> to vector<8x1xf32>
    %79 = arith.maximumf %62, %78 : vector<8x1xf32>
    %80 = vector.broadcast %79 : vector<8x1xf32> to vector<8x8xf32>
    %81 = arith.subf %46, %80 : vector<8x8xf32>
    %82 = math.exp %81 : vector<8x8xf32>
    %cst_32 = arith.constant dense<0.000000e+00> : vector<8xf32>
    %83 = vector.multi_reduction <add>, %82, %cst_32 [1] : vector<8x8xf32> to vector<8xf32>
    %84 = vector.shape_cast %83 : vector<8xf32> to vector<8x1xf32>
    %85 = vector.broadcast %79 : vector<8x1xf32> to vector<8x8xf32>
    %86 = arith.subf %50, %85 : vector<8x8xf32>
    %87 = math.exp %86 : vector<8x8xf32>
    %cst_33 = arith.constant dense<0.000000e+00> : vector<8xf32>
    %88 = vector.multi_reduction <add>, %87, %cst_33 [1] : vector<8x8xf32> to vector<8xf32>
    %89 = vector.shape_cast %88 : vector<8xf32> to vector<8x1xf32>
    %90 = arith.addf %84, %89 : vector<8x1xf32>
    %91 = vector.broadcast %79 : vector<8x1xf32> to vector<8x8xf32>
    %92 = arith.subf %54, %91 : vector<8x8xf32>
    %93 = math.exp %92 : vector<8x8xf32>
    %cst_34 = arith.constant dense<0.000000e+00> : vector<8xf32>
    %94 = vector.multi_reduction <add>, %93, %cst_34 [1] : vector<8x8xf32> to vector<8xf32>
    %95 = vector.shape_cast %94 : vector<8xf32> to vector<8x1xf32>
    %96 = arith.addf %90, %95 : vector<8x1xf32>
    %97 = vector.broadcast %79 : vector<8x1xf32> to vector<8x4xf32>
    %98 = arith.subf %76, %97 : vector<8x4xf32>
    %99 = math.exp %98 : vector<8x4xf32>
    %cst_35 = arith.constant dense<0.000000e+00> : vector<8xf32>
    %100 = vector.multi_reduction <add>, %99, %cst_35 [1] : vector<8x4xf32> to vector<8xf32>
    %101 = vector.shape_cast %100 : vector<8xf32> to vector<8x1xf32>
    %102 = arith.addf %96, %101 : vector<8x1xf32>
    %103 = math.log %102 : vector<8x1xf32>
    %104 = arith.addf %79, %103 : vector<8x1xf32>
    %cst_36 = arith.constant 0.000000e+00 : f32
    %105 = vector.broadcast %cst_36 : f32 to vector<8x8xf32>
    %106 = arith.select %44, %46, %105 : vector<8x8xi1>, vector<8x8xf32>
    %cst_37 = arith.constant dense<0.000000e+00> : vector<8xf32>
    %107 = vector.multi_reduction <add>, %106, %cst_37 [1] : vector<8x8xf32> to vector<8xf32>
    %108 = vector.shape_cast %107 : vector<8xf32> to vector<8x1xf32>
    %109 = arith.subf %104, %108 : vector<8x1xf32>
    %c0_38 = arith.constant 0 : index
    %c0_39 = arith.constant 0 : index
    %110 = vector.load %arg6[%c0_38, %c0_39] : memref<8x1xf32, #tpu.memory_space<vmem>>, vector<8x1xf32>
    tpu.vector_store %arg6[%c0_38, %c0_39], %109 {strides = array<i32>} : memref<8x1xf32, #tpu.memory_space<vmem>>, vector<8x1xf32>,
    return
  }
  func.func @transform_0(%arg0: i32) -> (i32, i32) {
    %c0_i32 = arith.constant 0 : i32
    %c0_i32_0 = arith.constant 0 : i32
    %c0_i32_1 = arith.constant 0 : i32
    return %c0_i32, %c0_i32_0 : i32, i32
  }
  func.func @transform_1(%arg0: i32) -> (i32, i32) {
    %c0_i32 = arith.constant 0 : i32
    %c0_i32_0 = arith.constant 0 : i32
    %c0_i32_1 = arith.constant 0 : i32
    return %c0_i32, %c0_i32_0 : i32, i32
  }
  func.func @transform_2(%arg0: i32) -> (i32, i32) {
    %c0_i32 = arith.constant 0 : i32
    %c0_i32_0 = arith.constant 0 : i32
    %c0_i32_1 = arith.constant 0 : i32
    return %c0_i32, %c0_i32_0 : i32, i32
  }
  func.func @transform_3(%arg0: i32) -> (i32, i32) {
    %c0_i32 = arith.constant 0 : i32
    %c0_i32_0 = arith.constant 0 : i32
    %c0_i32_1 = arith.constant 0 : i32
    return %c0_i32, %c0_i32_0 : i32, i32
  }
  func.func @transform_4(%arg0: i32) -> (i32, i32, i32) {
    %c0_i32 = arith.constant 0 : i32
    %c0_i32_0 = arith.constant 0 : i32
    %c0_i32_1 = arith.constant 0 : i32
    return %arg0, %c0_i32, %c0_i32_0 : i32, i32, i32
  }
  func.func @transform_5(%arg0: i32) -> (i32, i32) {
    %c0_i32 = arith.constant 0 : i32
    %c0_i32_0 = arith.constant 0 : i32
    return %arg0, %c0_i32 : i32, i32
  }
}

</mosaic_0001>

<bundles_post_ra>
// kernel: tpu_custom_call.1
= control target key start
LH: loop header
LB: loop body
LE: loop exit
PB: predicated region body
PF: predicated region fallthrough
CT: control target
= control target key end

     0   :  { %10 = vsyncpa [#allocation3], 0  ;;  %s1699_s0 = inlined_call_operand.hbm [shape: f32[8,32], index: 0, kind: input, shape index: {}]   ;;  %s1700_s1 = inlined_call_operand.hbm [shape: f32[8,32], index: 1, kind: input, shape index: {}]   ;;  %s1701_s2 = inlined_call_operand.vmem [shape: f32[1,8], index: 2, kind: input, shape index: {}]   ;;  %s1702_s3 = inlined_call_operand.vmem [shape: f32[1,8], index: 3, kind: input, shape index: {}]   ;;  %s1703_s4 = inlined_call_operand.hbm [shape: f32[8,4,32], index: 4, kind: input, shape index: {}]   ;;  %s1704_s5 = inlined_call_operand.vmem [shape: f32[8,1], index: 5, kind: output, shape index: {}]  }
   0x1   :  { %11 = vsyncpa [#allocation5], 0  ;;  %s1462_s18 = smov [#allocation4]   ;;  %s1463_s20 = smov [#allocation2]  }
   0x2   :  { %s28_s19 = sshll.u32 %s1462_s18, 4  ;;  %s18_s21 = sshll.u32 %s1463_s20, 4  ;;  %s29_s19 = int_to_ptr.vmem [resolvable:$true] %s28_s19  ;;  %s19_s21 = int_to_ptr.vmem [resolvable:$true] %s18_s21 }
   0x3   :  { %s1406_s22 = scalar_lea.vmem %s29_s19, 128  ;;  %p1411_p1 = scmp.lt.s32.totalorder %s29_s19, %s29_s19 }
   0x4   :  { %p1407_p0 = scmp.ne.s32.totalorder %s29_s19, %s1406_s22  ;;  %p1412_p2 = scmp.lt.s32.totalorder %s1406_s22, %s1406_s22 }
   0x6   :  { %p1413_p3 = por %p1412_p2, %p1411_p1 }
   0x8   :  { %p1414_p4 = pnand %p1413_p3, %p1407_p0 }
   0xa   :  { %1417 = shalt.err (!%p1414_p4)
}
   0xb   :  { %31 = dma.hbm_to_vmem [thread:$0]  %s1700_s1, 128, %s29_s19, [#allocation5]  }
   0xc   :  { %s1426_s25 = scalar_lea.vmem %s19_s21, 128  ;;  %p1431_p6 = scmp.lt.s32.totalorder %s19_s21, %s19_s21 }
   0xd   :  { %p1427_p5 = scmp.ne.s32.totalorder %s19_s21, %s1426_s25  ;;  %p1432_p7 = scmp.lt.s32.totalorder %s1426_s25, %s1426_s25 }
   0xf   :  { %p1433_p8 = por %p1432_p7, %p1431_p6 }
  0x11   :  { %p1434_p9 = pnand %p1433_p8, %p1427_p5 }
  0x13   :  { %1437 = shalt.err (!%p1434_p9)
}
  0x14   :  { %21 = dma.hbm_to_vmem [thread:$0]  %s1699_s0, 128, %s19_s21, [#allocation3]  }
  0x15   :  { %s1464_s28 = smov [#allocation6]  }
  0x16   :  { %s41_s29 = sshll.u32 %s1464_s28, 4  ;;  %s42_s29 = int_to_ptr.vmem [resolvable:$true] %s41_s29 }
  0x17   :  { %s1446_s30 = scalar_lea.vmem %s42_s29, 512  ;;  %p1451_p11 = scmp.lt.s32.totalorder %s42_s29, %s42_s29 }
  0x18   :  { %p1447_p10 = scmp.ne.s32.totalorder %s42_s29, %s1446_s30  ;;  %p1452_p12 = scmp.lt.s32.totalorder %s1446_s30, %s1446_s30 }
  0x1a   :  { %p1453_p13 = por %p1452_p12, %p1451_p11 }
  0x1c   :  { %p1454_p0 = pnand %p1453_p13, %p1447_p10 }
  0x1e   :  { %1457 = shalt.err (!%p1454_p0)
}
  0x1f   :  { %s1465_s1 = smov 64   ;;  %s1466_s6 = smov 4  }
  0x20   :  { %47 = dma.hbm_to_vmem [thread:$0]  %s1703_s4, 512, %s42_s29, [#allocation5], %s1465_s1, %s1465_s1, %s1466_s6  }
  0x21   :  { %1458 = dma.done.wait [#allocation3], 128  }
  0x22   :  { %1459 = vsyncadd [#allocation3], 4294967168 }
  0x23   :  { %1460 = dma.done.wait [#allocation5], 640  }
  0x24   :  { %1461 = vsyncadd [#allocation5], 4294966656  ;;  %v321_v0 = vlaneseq  ;;  %v1467_v1 = vmov 0.0   ;;  %vm1468_vm0 = vmmov 0   ;;  %v1469_v3 = vmov 1966171168  }
  0x25   :  { %1302 = vmatprep.subr.mxu0 %v1467_v1  ;;  %1307 = vmatprep.subr.mxu1 %v1467_v1  ;;  %v355_v4 = vunpack.c.l.s4 %v1469_v3  ;;  %vm65_vm1 = vcmask 261120   ;;  %v1519_v7 = vld [vmem:[#allocation4] sm:$0xff]  ;;  %v1521_v8 = vld [vmem:[#allocation2] sm:$0xff]  ;;  %v345_v10 = vld [vmem:[#allocation6] sm:$0xf]  ;;  %vm1010_vm2 = vcmask 257024  }
  0x26   :  { %1304 = vmatprep.mubr.msk.f32.mxu0 %vm1468_vm0, %v1467_v1  ;;  %1309 = vmatprep.mubr.msk.f32.mxu1 %vm1468_vm0, %v1467_v1  ;;  %v1516_v2 = vshrl.u32 %v321_v0, 7  ;;  %v353_v11 = vcombine.high %v1519_v7, %v1519_v7  ;;  %v346_v14 = vld [vmem:[#allocation6 + $0x4] sm:$0xf]  ;;  %v347_v15 = vld [vmem:[#allocation6 + $0x8] sm:$0xf]  ;;  %v1002_v27 = vmul.f32 %v345_v10, %v345_v10  ;;  %v64_v45 = vmul.f32 %v1521_v8, %v1521_v8 }
  0x27   :  { %v356_v5 = vunpack.c.0.s8 %v355_v4  ;;  %1303 = vmatpush3.xpose.msk.msra.mxu0 %vm65_vm1, %v1519_v7  ;;  %1308 = vmatpush3.xpose.msk.msra.mxu1 %vm65_vm1, %v1521_v8  ;;  %v348_v19 = vld [vmem:[#allocation6 + $0xc] sm:$0xf]  ;;  %v349_v20 = vld [vmem:[#allocation6 + $0x10] sm:$0xf]  ;;  %v1004_v21 = vmul.f32 %v347_v15, %v347_v15  ;;  %v350_v25 = vld [vmem:[#allocation6 + $0x14] sm:$0xf]  ;;  %v1003_v34 = vmul.f32 %v346_v14, %v346_v14  ;;  %v69_v47 = vmul.f32 %v1519_v7, %v1519_v7 }
  0x28   :  { %1312 = vmatprep.subr.mxu0 %v1467_v1  ;;  %1317 = vmatprep.subr.mxu1 %v1467_v1  ;;  %v351_v26 = vld [vmem:[#allocation6 + $0x18] sm:$0xf]  ;;  %v1005_v31 = vmul.f32 %v348_v19, %v348_v19  ;;  %v352_v32 = vld [vmem:[#allocation6 + $0x1c] sm:$0xf]  ;;  %v1011_v33 = vsel %vm1010_vm2, %v1002_v27, 0.0  ;;  %v1007_v37 = vmul.f32 %v350_v25, %v350_v25  ;;  %v1006_v39 = vmul.f32 %v349_v20, %v349_v20 }
  0x29   :  { %v359_v6 = vsub.s32 %v356_v5, %v1516_v2  ;;  %v1017_v30 = vsel %vm1010_vm2, %v1004_v21, 0.0  ;;  %1012 = vadd.xlane.f32.xlu0 %v1011_v33  ;;  %v1014_v38 = vsel %vm1010_vm2, %v1003_v34, 0.0  ;;  %v1009_v41 = vmul.f32 %v352_v32, %v352_v32 }
  0x2a   :  { %1305 = vmatmul.mubr.msk.f32.vlgmr.msra.gmra.mxu0 %vm65_vm1, %v1521_v8  ;;  %1310 = vmatmul.mubr.msk.f32.vlgmr.msra.gmra.mxu1 %vm65_vm1, %v1521_v8  ;;  %v1020_v36 = vsel %vm1010_vm2, %v1005_v31, 0.0  ;;  %v1026_v40 = vsel %vm1010_vm2, %v1007_v37, 0.0  ;;  %v1023_v42 = vsel %vm1010_vm2, %v1006_v39, 0.0  ;;  %v1008_v43 = vmul.f32 %v351_v26, %v351_v26 }
  0x2b   :  { %v360_v9 = vrot.slane %v1519_v7, %v359_v6  ;;  %1313 = vmatpush3.xpose.msk.msra.mxu0 %vm65_vm1, %v1519_v7  ;;  %1318 = vmatpush3.xpose.msk.msra.mxu1 %vm65_vm1, %v345_v10  ;;  %v367_v16 = vrot.slane %v353_v11, %v359_v6  ;;  %v1032_v44 = vsel %vm1010_vm2, %v1009_v41, 0.0  ;;  %v66_v48 = vsel %vm65_vm1, %v64_v45, 0.0 }
  0x2c   :  { %1314 = vmatprep.mubr.msk.f32.mxu0 %vm1468_vm0, %v1467_v1  ;;  %1319 = vmatprep.mubr.msk.f32.mxu1 %vm1468_vm0, %v1467_v1  ;;  %v1029_v46 = vsel %vm1010_vm2, %v1008_v43, 0.0  ;;  %v70_v49 = vsel %vm65_vm1, %v69_v47, 0.0  ;;  %v1596_v50 = vand.u32 127, %v321_v0  ;;  %vm1075_vm3 = vcmask 1041409  }
  0x2d   :  { %v368_v12 = vcombine.high %v360_v9, %v360_v9  ;;  %v376_v13 = vrot.slane %v360_v9, %v359_v6  ;;  %1322 = vmatprep.subr.mxu0 %v1467_v1  ;;  %1327 = vmatprep.subr.mxu1 %v1467_v1  ;;  %v369_v22 = vcombine.high %v367_v16, %v367_v16  ;;  %vm1077_vm4 = vcmask 1042434  }
  0x2e   :  { %1315 = vmatmul.mubr.msk.f32.vlgmr.msra.gmra.mxu0 %vm65_vm1, %v1519_v7  ;;  %v383_v24 = vrot.slane %v367_v16, %v359_v6  ;;  %1018 = vadd.xlane.f32.xlu1 %v1017_v30  ;;  %v1045_v52 = vsub.s32 %v1596_v50, %v1516_v2  ;;  %vm1079_vm5 = vcmask 1043459   ;;  %vm1081_vm6 = vcmask 1044484   ;;  %v1262_v7 = vld [vmem:[%s1702_s3] ss:$0 sm:$0xff] }
  0x2f   :  { %1320 = vmatmul.mubr.msk.f32.vlgmr.msra.gmra.mxu1 %vm65_vm1, %v376_v13  ;;  %v390_v17 = vrot.slane %v368_v12, %v359_v6  ;;  %v398_v18 = vcombine.high %v376_v13, %v376_v13  ;;  %1323 = vmatpush3.xpose.msk.msra.mxu0 %vm65_vm1, %v346_v14  ;;  %v397_v28 = vrot.slane %v369_v22, %v359_v6  ;;  %vm1083_vm7 = vcmask 1045509   ;;  %v1263_v6 = vld [vmem:[%s1701_s2] ss:$0 sm:$0xff] }
  0x30   :  { %1328 = vmatpush3.xpose.msk.msra.mxu1 %vm65_vm1, %v347_v15  ;;  %1324 = vmatprep.mubr.msk.f32.mxu0 %vm1468_vm0, %v1467_v1  ;;  %v399_v29 = vcombine.high %v383_v24, %v383_v24  ;;  %vm1085_vm8 = vcmask 1046534   ;;  %vm1087_vm9 = vcmask 1047559   ;;  %vm327_vm10 = vcmp.eq.s32.totalorder %v1516_v2, %v1596_v50 }
  0x31   :  { %1329 = vmatprep.mubr.msk.f32.mxu1 %vm1468_vm0, %v1467_v1  ;;  %1332 = vmatprep.subr.mxu0 %v1467_v1  ;;  %v400_v23 = vcombine.high %v390_v17, %v390_v17  ;;  %v401_v35 = vcombine.high %v397_v28, %v397_v28  ;;  %vm333_vm11 = vcmask 64512   ;;  %vm1148_vm12 = vcmask 31744  }
  0x32   :  { %1337 = vmatprep.subr.mxu1 %v1467_v1  ;;  %1325 = vmatmul.mubr.msk.f32.vlgmr.msra.gmra.mxu0 %vm65_vm1, %v390_v17  ;;  %vm1248_vm13 = vcmask 7168  }
  0x33   :  { %1330 = vmatmul.mubr.msk.f32.vlgmr.msra.gmra.mxu1 %vm65_vm1, %v398_v18  ;;  %1333 = vmatpush3.xpose.msk.msra.mxu0 %vm65_vm1, %v348_v19 }
  0x34   :  { %1338 = vmatpush3.xpose.msk.msra.mxu1 %vm65_vm1, %v349_v20  ;;  %1334 = vmatprep.mubr.msk.f32.mxu0 %vm1468_vm0, %v1467_v1 }
  0x35   :  { %1339 = vmatprep.mubr.msk.f32.mxu1 %vm1468_vm0, %v1467_v1  ;;  %1342 = vmatprep.subr.mxu0 %v1467_v1 }
  0x36   :  { %1347 = vmatprep.subr.mxu1 %v1467_v1  ;;  %1335 = vmatmul.mubr.msk.f32.vlgmr.msra.gmra.mxu0 %vm65_vm1, %v400_v23 }
  0x37   :  { %1340 = vmatmul.mubr.msk.f32.vlgmr.msra.gmra.mxu1 %vm65_vm1, %v383_v24  ;;  %1343 = vmatpush3.xpose.msk.msra.mxu0 %vm65_vm1, %v350_v25 }
  0x38   :  { %1348 = vmatpush3.xpose.msk.msra.mxu1 %vm65_vm1, %v351_v26  ;;  %1344 = vmatprep.mubr.msk.f32.mxu0 %vm1468_vm0, %v1467_v1 }
  0x39   :  { %1349 = vmatprep.mubr.msk.f32.mxu1 %vm1468_vm0, %v1467_v1  ;;  %1352 = vmatprep.subr.mxu0 %v1467_v1 }
  0x3a   :  { %1345 = vmatmul.mubr.msk.f32.vlgmr.msra.gmra.mxu0 %vm65_vm1, %v397_v28  ;;  %1021 = vadd.xlane.f32.xlu1 %v1020_v36 }
  0x3b   :  { %1350 = vmatmul.mubr.msk.f32.vlgmr.msra.gmra.mxu1 %vm65_vm1, %v399_v29  ;;  %1353 = vmatpush3.xpose.msk.msra.mxu0 %vm65_vm1, %v352_v32 }
  0x3c   :  { %1354 = vmatprep.mubr.msk.f32.mxu0 %vm1468_vm0, %v1467_v1  ;;  %1015 = vadd.xlane.f32.xlu0 %v1014_v38 }
  0x3e   :  { %1355 = vmatmul.mubr.msk.f32.vlgmr.msra.gmra.mxu0 %vm65_vm1, %v401_v35  ;;  %1027 = vadd.xlane.f32.xlu1 %v1026_v40 }
  0x40   :  { %1024 = vadd.xlane.f32.xlu0 %v1023_v42 }
  0x42   :  { %1033 = vadd.xlane.f32.xlu1 %v1032_v44 }
  0x44   :  { %1030 = vadd.xlane.f32.xlu0 %v1029_v46 }
  0x46   :  { %67 = vadd.xlane.f32.xlu1 %v66_v48 }
  0x48   :  { %71 = vadd.xlane.f32.xlu0 %v70_v49 }
  0xb2   :  { %v1013_v53 = vpop.xlane.xlu0 %1012 }
  0xb3   :  { %v1046_v55 = vrot.slane %v1013_v53, %v1045_v52 }
  0xb7   :  { %v1019_v51 = vpop.xlane.xlu1 %1018 }
  0xb8   :  { %v1054_v56 = vrot.slane %v1019_v51, %v1045_v52 }
  0xc3   :  { %v1022_v54 = vpop.xlane.xlu1 %1021 }
  0xc4   :  { %v1058_v58 = vrot.slane %v1022_v54, %v1045_v52 }
  0xc5   :  { %v1016_v57 = vpop.xlane.xlu0 %1015 }
  0xc6   :  { %v1050_v60 = vrot.slane %v1016_v57, %v1045_v52 }
  0xc7   :  { %v1028_v59 = vpop.xlane.xlu1 %1027 }
  0xc8   :  { %v1076_v61 = vsel %vm1075_vm3, %v1050_v60, %v1046_v55  ;;  %v1066_v62 = vrot.slane %v1028_v59, %v1045_v52 }
  0xc9   :  { %v1078_v63 = vsel %vm1077_vm4, %v1054_v56, %v1076_v61  ;;  %v1025_v0 = vpop.xlane.xlu0 %1024 }
  0xca   :  { %v1080_v3 = vsel %vm1079_vm5, %v1058_v58, %v1078_v63  ;;  %v1062_v4 = vrot.slane %v1025_v0, %v1045_v52 }
  0xcb   :  { %v1034_v1 = vpop.xlane.xlu1 %1033 }
  0xcc   :  { %v1082_v5 = vsel %vm1081_vm6, %v1062_v4, %v1080_v3  ;;  %v1074_v8 = vrot.slane %v1034_v1, %v1045_v52 }
  0xcd   :  { %v1031_v9 = vpop.xlane.xlu0 %1030  ;;  %v1084_v10 = vsel %vm1083_vm7, %v1066_v62, %v1082_v5 }
  0xce   :  { %v1070_v11 = vrot.slane %v1031_v9, %v1045_v52 }
  0xcf   :  { %v68_v12 = vpop.xlane.xlu1 %67 }
  0xd0   :  { %v303_v13 = vmul.f32 %v1262_v7, %v68_v12  ;;  %v313_v14 = vmul.f32 %v1263_v6, %v68_v12  ;;  %v1086_v15 = vsel %vm1085_vm8, %v1070_v11, %v1084_v10 }
  0xd1   :  { %v1088_v16 = vsel %vm1087_vm9, %v1074_v8, %v1086_v15  ;;  %v72_v17 = vpop.xlane.xlu0 %71 }
  0xd2   :  { %v304_v18 = vmax.f32 %v303_v13, 1e-16  ;;  %v1090_v19 = vmul.f32 %v1088_v16, %v72_v17  ;;  %v314_v20 = vmax.f32 %v313_v14, 1e-16  ;;  %v317_v21 = vmul.f32 %v1262_v7, %v72_v17 }
  0xd4   :  { %1366 = vrsqrt.f32 %v304_v18  ;;  %v1091_v22 = vmax.f32 %v1090_v19, 1e-16  ;;  %v318_v23 = vmax.f32 %v317_v21, 1e-16 }
  0xd5   :  { %1368 = vrsqrt.f32 %v314_v20 }
  0xd6   :  { %1370 = vrsqrt.f32 %v1091_v22 }
  0xd7   :  { %1372 = vrsqrt.f32 %v318_v23 }
  0xe1   :  { %v1367_v24 = vpop.eup %1366 }
  0xe2   :  { %v1369_v25 = vpop.eup %1368 }
  0xe3   :  { %v1613_v28 = vpop.eup %1370 }
  0xe4   :  { %v1373_v31 = vpop.eup %1372  ;;  %v1094_v38 = vrot.slane %v1613_v28, 1  ;;  %v1095_v42 = vrot.slane %v1613_v28, 2  ;;  %v1096_v59 = vrot.slane %v1613_v28, 3  ;;  %v1097_v60 = vrot.slane %v1613_v28, 4 }
  0xe5   :  { %v1098_v7 = vrot.slane %v1613_v28, 5  ;;  %v1099_v11 = vrot.slane %v1613_v28, 6 }
  0xea   :  { %v147_v26 = vpop.f32.mrf.mxu0  ;;  %v220_v27 = vpop.f32.mrf.mxu1 }
  0xeb   :  { %v306_v29 = vmul.f32 %v1367_v24, %v147_v26  ;;  %v316_v30 = vmul.f32 %v1369_v25, %v220_v27  ;;  %v1100_v24 = vrot.slane %v1613_v28, 7 }
  0xec   :  { %v1306_v32 = vpop.f32.mrf.mxu0  ;;  %v1311_v33 = vpop.f32.mrf.mxu1 }
  0xed   :  { %v1617_v34 = vmul.f32 20.0, %v306_v29  ;;  %v329_v35 = vmul.f32 20.0, %v316_v30 }
  0xee   :  { %v293_v36 = vpop.f32.mrf.mxu0 }
  0xef   :  { %v473_v37 = vpop.f32.mrf.mxu1  ;;  %v320_v39 = vmul.f32 %v1373_v31, %v293_v36  ;;  %v1623_v40 = vsel %vm327_vm10, -inf, %v329_v35  ;;  %v334_v41 = vsel %vm333_vm11, %v1617_v34, -inf }
  0xf0   :  { %v1316_v43 = vpop.f32.mrf.mxu0  ;;  %v337_v45 = vsel %vm333_vm11, %v1623_v40, -inf  ;;  %335 = vmax.xlane.f32.xlu0 %v334_v41  ;;  %v1109_v49 = vmul.f32 %v1613_v28, %v473_v37 }
  0xf1   :  { %v1321_v44 = vpop.f32.mrf.mxu1  ;;  %v331_v46 = vmul.f32 20.0, %v320_v39  ;;  %338 = vmax.xlane.f32.xlu1 %v337_v45 }
  0xf2   :  { %v548_v47 = vpop.f32.mrf.mxu0  ;;  %v1644_v63 = vmul.f32 20.0, %v1109_v49 }
  0xf3   :  { %v623_v48 = vpop.f32.mrf.mxu1  ;;  %v1110_v51 = vmul.f32 %v1094_v38, %v548_v47  ;;  %v1634_v53 = vsel %vm327_vm10, -inf, %v331_v46 }
  0xf4   :  { %v1111_v52 = vmul.f32 %v1095_v42, %v623_v48  ;;  %v1326_v54 = vpop.f32.mrf.mxu0  ;;  %v341_v56 = vsel %vm333_vm11, %v1634_v53, -inf }
  0xf5   :  { %v1331_v55 = vpop.f32.mrf.mxu1  ;;  %v1638_v57 = vmul.f32 20.0, %v1110_v51  ;;  %342 = vmax.xlane.f32.xlu0 %v341_v56 }
  0xf6   :  { %v1640_v58 = vmul.f32 20.0, %v1111_v52  ;;  %v698_v61 = vpop.f32.mrf.mxu0 }
  0xf7   :  { %v773_v62 = vpop.f32.mrf.mxu1  ;;  %v1133_v0 = vrot.slane %v1638_v57, 7  ;;  %v1112_v1 = vmul.f32 %v1096_v59, %v698_v61 }
  0xf8   :  { %v1113_v3 = vmul.f32 %v1097_v60, %v773_v62  ;;  %v1135_v4 = vrot.slane %v1640_v58, 6  ;;  %v1336_v5 = vpop.f32.mrf.mxu0 }
  0xf9   :  { %v1341_v6 = vpop.f32.mrf.mxu1  ;;  %v1134_v8 = vsel %vm1075_vm3, %v1133_v0, %v1644_v63  ;;  %v1120_v9 = vmul.f32 20.0, %v1112_v1 }
  0xfa   :  { %v1121_v10 = vmul.f32 20.0, %v1113_v3  ;;  %v848_v12 = vpop.f32.mrf.mxu0  ;;  %v1136_v17 = vsel %vm1077_vm4, %v1135_v4, %v1134_v8 }
  0xfb   :  { %v923_v13 = vpop.f32.mrf.mxu1  ;;  %v1137_v14 = vrot.slane %v1120_v9, 5  ;;  %v1114_v15 = vmul.f32 %v1098_v7, %v848_v12 }
  0xfc   :  { %v1115_v16 = vmul.f32 %v1099_v11, %v923_v13  ;;  %v1139_v18 = vrot.slane %v1121_v10, 4  ;;  %v1346_v19 = vpop.f32.mrf.mxu0 }
  0xfd   :  { %v1351_v20 = vpop.f32.mrf.mxu1  ;;  %v1138_v21 = vsel %vm1079_vm5, %v1137_v14, %v1136_v17  ;;  %v1122_v22 = vmul.f32 20.0, %v1114_v15 }
  0xfe   :  { %v1123_v23 = vmul.f32 20.0, %v1115_v16  ;;  %v998_v25 = vpop.f32.mrf.mxu0  ;;  %v1140_v29 = vsel %vm1081_vm6, %v1139_v18, %v1138_v21 }
  0xff   :  { %v1141_v26 = vrot.slane %v1122_v22, 3  ;;  %v1116_v27 = vmul.f32 %v1100_v24, %v998_v25  ;;  %v1243_v25 = vsel %vm327_vm10, %v1617_v34, 0.0 }
 0x100   :  { %v1143_v30 = vrot.slane %v1123_v23, 2  ;;  %v1356_v31 = vpop.f32.mrf.mxu0 }
 0x101   :  { %v1124_v32 = vmul.f32 20.0, %v1116_v27  ;;  %v1142_v33 = vsel %vm1083_vm7, %v1141_v26, %v1140_v29 }
 0x102   :  { %v1144_v36 = vsel %vm1085_vm8, %v1143_v30, %v1142_v33 }
 0x103   :  { %v1145_v35 = vrot.slane %v1124_v32, 1 }
 0x105   :  { %v1146_v37 = vsel %vm1087_vm9, %v1145_v35, %v1144_v36 }
 0x106   :  { %v1149_v38 = vsel %vm1148_vm12, %v1146_v37, -inf  ;;  %v1244_v37 = vsel %vm333_vm11, %v1243_v25, 0.0 }
 0x107   :  { %1150 = vmax.xlane.f32.xlu1 %v1149_v38 }
 0x179   :  { %v336_v28 = vpop.xlane.xlu0 %335 }
 0x17a   :  { %v339_v39 = vpop.xlane.xlu1 %338 }
 0x17b   :  { %v340_v42 = vmax.f32 %v336_v28, %v339_v39 }
 0x17e   :  { %v343_v41 = vpop.xlane.xlu0 %342 }
 0x17f   :  { %v344_v43 = vmax.f32 %v340_v42, %v343_v41 }
 0x190   :  { %v1151_v44 = vpop.xlane.xlu1 %1150 }
 0x191   :  { %v1660_v45 = vmax.f32 %v344_v43, %v1151_v44 }
 0x193   :  { %v1159_v46 = vsub.f32 %v1623_v40, %v1660_v45  ;;  %v1153_v47 = vsub.f32 %v1617_v34, %v1660_v45  ;;  %v1166_v48 = vsub.f32 %v1634_v53, %v1660_v45  ;;  %v1174_v49 = vrot.slane %v1660_v45, 1 }
 0x194   :  { %v1175_v51 = vrot.slane %v1660_v45, 2  ;;  %v1176_v52 = vrot.slane %v1660_v45, 3  ;;  %v1177_v54 = vrot.slane %v1660_v45, 4  ;;  %v1178_v55 = vrot.slane %v1660_v45, 5 }
 0x195   :  { %v1160_v56 = vmul.f32 1.442695, %v1159_v46  ;;  %v1154_v59 = vmul.f32 1.442695, %v1153_v47  ;;  %v1167_v60 = vmul.f32 1.442695, %v1166_v48  ;;  %v1189_v40 = vsub.f32 %v1644_v63, %v1660_v45 }
 0x196   :  { %v1179_v61 = vrot.slane %v1660_v45, 6  ;;  %v1180_v53 = vrot.slane %v1660_v45, 7  ;;  %v1190_v62 = vsub.f32 %v1638_v57, %v1174_v49  ;;  %v1191_v0 = vsub.f32 %v1640_v58, %v1175_v51 }
 0x197   :  { %1374 = vpow2.f32 %v1160_v56  ;;  %v1192_v1 = vsub.f32 %v1120_v9, %v1176_v52  ;;  %v1193_v3 = vsub.f32 %v1121_v10, %v1177_v54  ;;  %v1194_v4 = vsub.f32 %v1122_v22, %v1178_v55 }
 0x198   :  { %1376 = vpow2.f32 %v1154_v59  ;;  %v1195_v5 = vsub.f32 %v1123_v23, %v1179_v61  ;;  %v1196_v6 = vsub.f32 %v1124_v32, %v1180_v53  ;;  %v1197_v7 = vmul.f32 1.442695, %v1189_v40 }
 0x199   :  { %1378 = vpow2.f32 %v1167_v60  ;;  %v1199_v8 = vmul.f32 1.442695, %v1190_v62  ;;  %v1201_v11 = vmul.f32 1.442695, %v1191_v0  ;;  %v1203_v63 = vmul.f32 1.442695, %v1192_v1 }
 0x19a   :  { %1380 = vpow2.f32 %v1197_v7  ;;  %v1205_v12 = vmul.f32 1.442695, %v1193_v3  ;;  %v1207_v13 = vmul.f32 1.442695, %v1194_v4  ;;  %v1209_v57 = vmul.f32 1.442695, %v1195_v5 }
 0x19b   :  { %1382 = vpow2.f32 %v1199_v8  ;;  %v1211_v58 = vmul.f32 1.442695, %v1196_v6 }
 0x19c   :  { %1384 = vpow2.f32 %v1201_v11 }
 0x19d   :  { %1386 = vpow2.f32 %v1203_v63 }
 0x19e   :  { %1388 = vpow2.f32 %v1205_v12 }
 0x19f   :  { %1390 = vpow2.f32 %v1207_v13 }
 0x1a0   :  { %1392 = vpow2.f32 %v1209_v57 }
 0x1a1   :  { %1394 = vpow2.f32 %v1211_v58 }
 0x1a4   :  { %v1375_v9 = vpop.eup %1374 }
 0x1a5   :  { %v1377_v10 = vpop.eup %1376  ;;  %v1162_v14 = vsel %vm333_vm11, %v1375_v9, 0.0 }
 0x1a6   :  { %v1379_v15 = vpop.eup %1378  ;;  %1163 = vadd.xlane.f32.xlu1 %v1162_v14  ;;  %v1156_v16 = vsel %vm333_vm11, %v1377_v10, 0.0 }
 0x1a7   :  { %v1381_v17 = vpop.eup %1380  ;;  %1157 = vadd.xlane.f32.xlu0 %v1156_v16  ;;  %v1169_v22 = vsel %vm333_vm11, %v1379_v15, 0.0 }
 0x1a8   :  { %v1383_v18 = vpop.eup %1382 }
 0x1a9   :  { %v1385_v19 = vpop.eup %1384  ;;  %v1221_v20 = vrot.slane %v1383_v18, 7 }
 0x1aa   :  { %v1387_v21 = vpop.eup %1386  ;;  %v1223_v23 = vrot.slane %v1385_v19, 6 }
 0x1ab   :  { %v1389_v24 = vpop.eup %1388  ;;  %1170 = vadd.xlane.f32.xlu0 %v1169_v22  ;;  %v1222_v26 = vsel %vm1075_vm3, %v1221_v20, %v1381_v17  ;;  %v1225_v27 = vrot.slane %v1387_v21, 5 }
 0x1ac   :  { %v1391_v29 = vpop.eup %1390  ;;  %v1224_v30 = vsel %vm1077_vm4, %v1223_v23, %v1222_v26  ;;  %v1227_v31 = vrot.slane %v1389_v24, 4 }
 0x1ad   :  { %v1393_v32 = vpop.eup %1392  ;;  %v1226_v33 = vsel %vm1079_vm5, %v1225_v27, %v1224_v30  ;;  %v1229_v35 = vrot.slane %v1391_v29, 3 }
 0x1ae   :  { %v1395_v36 = vpop.eup %1394  ;;  %v1228_v38 = vsel %vm1081_vm6, %v1227_v31, %v1226_v33  ;;  %v1231_v28 = vrot.slane %v1393_v32, 2 }
 0x1af   :  { %1245 = vadd.xlane.f32.xlu0 %v1244_v37  ;;  %v1230_v2 = vsel %vm1083_vm7, %v1229_v35, %v1228_v38  ;;  %v1233_v50 = vrot.slane %v1395_v36, 1 }
 0x1b0   :  { %v1232_v34 = vsel %vm1085_vm8, %v1231_v28, %v1230_v2 }
 0x1b1   :  { %v1234_v39 = vsel %vm1087_vm9, %v1233_v50, %v1232_v34 }
 0x1b2   :  { %v1236_v41 = vsel %vm1148_vm12, %v1234_v39, 0.0 }
 0x1b3   :  { %1237 = vadd.xlane.f32.xlu1 %v1236_v41 }
 0x22f   :  { %v1164_v43 = vpop.xlane.xlu1 %1163 }
 0x230   :  { %v1158_v42 = vpop.xlane.xlu0 %1157 }
 0x231   :  { %v1165_v46 = vadd.f32 %v1164_v43, %v1158_v42 }
 0x234   :  { %v1171_v44 = vpop.xlane.xlu0 %1170 }
 0x235   :  { %v1172_v47 = vadd.f32 %v1171_v44, %v1165_v46 }
 0x238   :  { %v1246_v55 = vpop.xlane.xlu0 %1245 }
 0x23c   :  { %v1238_v48 = vpop.xlane.xlu1 %1237 }
 0x23d   :  { %v1239_v49 = vadd.f32 %v1238_v48, %v1172_v47 }
 0x23f   :  { %1396 = vlog2.f32 %v1239_v49 }
 0x24c   :  { %v1397_v51 = vpop.eup %1396 }
 0x24d   :  { %v1241_v52 = vmul.f32 0.6931472, %v1397_v51 }
 0x24f   :  { %v1242_v54 = vadd.f32 %v1241_v52, %v1660_v45 }
 0x251   :  { %v1247_v56 = vsub.f32 %v1242_v54, %v1246_v55 }
 0x253   :  { %1249 = vst.msk [vmem:[%s1704_s5] sm:$0xff] %vm1248_vm13, %v1247_v56 }
 0x254   :  { %1254 = vsyncpa [#allocation3], 1 }
 0x255   :  { %1255 = vsyncpa [#allocation5], 1 }

</bundles_post_ra>
